<compile_context>
chip_gen: v6e
topology: v6e:2x2x1
jax: 0.10.0
libtpu: 0.0.40
codegen_flags: <defaults>
</compile_context>

<pallas_src>
import jax
import jax.numpy as jnp
from jax.experimental import pallas as pl
from jax.experimental.pallas import tpu as pltpu

LANE = 128
IN_F = 10           # network input width
OUT_F = 10          # network output width
OUT_PAD = 16        # lane width of the kernel output block (>= OUT_F)
W_ROWS = 4 * LANE   # weight slab rows: W1..W4, each in its own 128-row region
MAX_TB = 4096       # batch-tile cap (rows)


def _cdiv(a, b):
    return -(-a // b)


def _round_up(n, m):
    return _cdiv(n, m) * m


def _choose_tile(batch):
    """Pick (tile_rows, padded_batch): minimize batch padding, amortize the
    per-grid-step overhead, and give v7x's two TensorCores >= 2 parallel tiles
    whenever the batch allows."""
    b8 = _round_up(max(batch, 8), 8)
    n_tiles = _cdiv(b8, MAX_TB)
    if b8 >= 16:
        n_tiles = max(n_tiles, 2)        # megacore: keep both v7x TCs busy
    tb = _round_up(_cdiv(b8, n_tiles), 8)
    b_pad = _round_up(b8, tb)
    return tb, b_pad


def _mlp_kernel(x_ref, w_ref, b_ref, o_ref):
    """One batch tile: 4 matmuls (bf16 operands, f32 accum) + biases + 3 ReLUs."""
    x = x_ref[...].astype(jnp.bfloat16)              # (tb, 10)

    w1 = w_ref[0:IN_F, :]                            # (10, 128)  true K of fc1
    w2 = w_ref[LANE:2 * LANE, :]                     # (128, 128) zero-padded
    w3 = w_ref[2 * LANE:3 * LANE, :]
    w4 = w_ref[3 * LANE:4 * LANE, :]
    b1 = b_ref[0:1, :]                               # (1, 128) f32
    b2 = b_ref[1:2, :]
    b3 = b_ref[2:3, :]
    b4 = b_ref[3:4, :]

    h = jnp.dot(x, w1, preferred_element_type=jnp.float32) + b1
    h = jnp.maximum(h, 0.0)
    h = jnp.dot(h.astype(jnp.bfloat16), w2, preferred_element_type=jnp.float32) + b2
    h = jnp.maximum(h, 0.0)
    h = jnp.dot(h.astype(jnp.bfloat16), w3, preferred_element_type=jnp.float32) + b3
    h = jnp.maximum(h, 0.0)
    out = jnp.dot(h.astype(jnp.bfloat16), w4, preferred_element_type=jnp.float32) + b4
    o_ref[...] = out[:, :OUT_PAD]                    # lane-slice to the 16-wide block


def pack_params(params):
    """Pack weights into one bf16 (512, 128) slab and biases into an f32
    (8, 128) block.  Call once and reuse across forward calls."""
    w_slab = jnp.zeros((W_ROWS, LANE), jnp.float32)
    b_slab = jnp.zeros((8, LANE), jnp.float32)
    for i in range(4):
        wt = params[f"w{i + 1}"].T.astype(jnp.float32)        # (in, out)
        w_slab = w_slab.at[i * LANE:i * LANE + wt.shape[0], :wt.shape[1]].set(wt)
        b = params[f"b{i + 1}"].astype(jnp.float32)
        b_slab = b_slab.at[i, :b.shape[0]].set(b)
    return w_slab.astype(jnp.bfloat16), b_slab


def tictactoe_net_forward(x, w_slab, b_slab):
    """x: (B, 10).  w_slab/b_slab: packed params from pack_params()."""
    B, in_f = x.shape
    assert in_f == IN_F

    tb, b_pad = _choose_tile(B)
    num_tiles = b_pad // tb

    x32 = x.astype(jnp.float32)
    if b_pad != B:
        # Zero row-padding keeps boundary-tile rows finite; they are sliced away.
        x32 = jnp.pad(x32, ((0, b_pad - B), (0, 0)))

    out = pl.pallas_call(
        _mlp_kernel,
        out_shape=jax.ShapeDtypeStruct((b_pad, OUT_PAD), jnp.float32),
        grid=(num_tiles,),
        in_specs=[
            pl.BlockSpec((tb, IN_F), lambda i: (i, 0)),        # logical-width x tile
            pl.BlockSpec((W_ROWS, LANE), lambda i: (0, 0)),    # resident bf16 weights
            pl.BlockSpec((8, LANE), lambda i: (0, 0)),         # resident f32 biases
        ],
        out_specs=pl.BlockSpec((tb, OUT_PAD), lambda i: (i, 0)),
        compiler_params=pltpu.CompilerParams(
            dimension_semantics=("parallel",),                 # megacore on v7x
        ),
    )(x32, w_slab, b_slab)

    return out[:B, :OUT_F]


def init_params(key):
    """Deterministic init matching nn.Linear shapes (W: (out, in), b: (out,))."""
    dims = [(16, 10), (32, 16), (16, 32), (10, 16)]
    params = {}
    for i, (out_f, in_f) in enumerate(dims, start=1):
        key, kw, kb = jax.random.split(key, 3)
        bound = 1.0 / jnp.sqrt(in_f)  # PyTorch default uniform bound
        params[f"w{i}"] = jax.random.uniform(
            kw, (out_f, in_f), jnp.float32, -bound, bound)
        params[f"b{i}"] = jax.random.uniform(
            kb, (out_f,), jnp.float32, -bound, bound)
    return params


def reference_forward(x, params):
    """Pure-JAX f32 reference reproducing the PyTorch forward for verification."""
    h = jnp.maximum(x @ params["w1"].T + params["b1"], 0.0)
    h = jnp.maximum(h @ params["w2"].T + params["b2"], 0.0)
    h = jnp.maximum(h @ params["w3"].T + params["b3"], 0.0)
    return h @ params["w4"].T + params["b4"]


if __name__ == "__main__":
    key = jax.random.PRNGKey(0)
    key, kx = jax.random.split(key)
    params = init_params(key)

    # Pack weights/biases once (cache this across forward calls in real use).
    w_slab, b_slab = pack_params(params)

    # Cache the jitted callable per batch shape (avoids retraces per call).
    fwd = jax.jit(tictactoe_net_forward)

    # Small inference-style batch (single tile, launch-latency-bound regime).
    x_small = jax.random.uniform(kx, (8, IN_F), jnp.float32, -1.0, 1.0)
    out_small = jax.block_until_ready(fwd(x_small, w_slab, b_slab))

    # Ragged batch exercising row padding and the >= 2-tile (v7x megacore) path.
    key, kx2 = jax.random.split(key)
    x_big = jax.random.uniform(kx2, (50, IN_F), jnp.float32, -1.0, 1.0)
    out_big = jax.block_until_ready(fwd(x_big, w_slab, b_slab))

    ref_small = reference_forward(x_small, params)
    ref_big = reference_forward(x_big, params)

    assert out_small.shape == (8, OUT_F)
    assert out_big.shape == (50, OUT_F)
    # bf16 matmul operands (f32 accumulation) -> looser tolerance than pure f32.
    assert jnp.allclose(out_small, ref_small, atol=3e-2, rtol=3e-2), "mismatch (small batch)"
    assert jnp.allclose(out_big, ref_big, atol=3e-2, rtol=3e-2), "mismatch (padded batch)"

    print("KERNEL_OK")
</pallas_src>

<mosaic_0001>
module attributes {stable_mosaic.version = 11 : i64} {
  func.func @_mlp_kernel(%arg0: i32, %arg1: memref<8x10xf32, #tpu.memory_space<vmem>>, %arg2: memref<512x128xbf16, #tpu.memory_space<vmem>>, %arg3: memref<8x128xf32, #tpu.memory_space<vmem>>, %arg4: memref<8x16xf32, #tpu.memory_space<vmem>>) attributes {dimension_semantics = [#tpu.dimension_semantics<parallel>], iteration_bounds = array<i64: 1>, scalar_prefetch = 0 : i64, scratch_operands = 0 : i64, tpu.core_type = #tpu.core_type<tc>, window_params = [{transform_indices = @transform_0, window_bounds = array<i64: 8, 10>}, {pipeline_mode = #tpu.pipeline_mode<synchronous>, transform_indices = @transform_1, window_bounds = array<i64: 512, 128>}, {pipeline_mode = #tpu.pipeline_mode<synchronous>, transform_indices = @transform_2, window_bounds = array<i64: 8, 128>}, {transform_indices = @transform_3, window_bounds = array<i64: 8, 16>}]} {
    %c0 = arith.constant 0 : index
    %c0_0 = arith.constant 0 : index
    %0 = vector.load %arg1[%c0, %c0_0] : memref<8x10xf32, #tpu.memory_space<vmem>>, vector<8x10xf32>
    %1 = arith.truncf %0 : vector<8x10xf32> to vector<8x10xbf16>
    %c0_1 = arith.constant 0 : index
    %c0_2 = arith.constant 0 : index
    %2 = vector.load %arg2[%c0_1, %c0_2] : memref<512x128xbf16, #tpu.memory_space<vmem>>, vector<10x128xbf16>
    %c128 = arith.constant 128 : index
    %c0_3 = arith.constant 0 : index
    %3 = vector.load %arg2[%c128, %c0_3] : memref<512x128xbf16, #tpu.memory_space<vmem>>, vector<128x128xbf16>
    %c256 = arith.constant 256 : index
    %c0_4 = arith.constant 0 : index
    %4 = vector.load %arg2[%c256, %c0_4] : memref<512x128xbf16, #tpu.memory_space<vmem>>, vector<128x128xbf16>
    %c384 = arith.constant 384 : index
    %c0_5 = arith.constant 0 : index
    %5 = vector.load %arg2[%c384, %c0_5] : memref<512x128xbf16, #tpu.memory_space<vmem>>, vector<128x128xbf16>
    %c0_6 = arith.constant 0 : index
    %c0_7 = arith.constant 0 : index
    %6 = vector.load %arg3[%c0_6, %c0_7] : memref<8x128xf32, #tpu.memory_space<vmem>>, vector<1x128xf32>
    %c1 = arith.constant 1 : index
    %c0_8 = arith.constant 0 : index
    %7 = vector.load %arg3[%c1, %c0_8] : memref<8x128xf32, #tpu.memory_space<vmem>>, vector<1x128xf32>
    %c2 = arith.constant 2 : index
    %c0_9 = arith.constant 0 : index
    %8 = vector.load %arg3[%c2, %c0_9] : memref<8x128xf32, #tpu.memory_space<vmem>>, vector<1x128xf32>
    %c3 = arith.constant 3 : index
    %c0_10 = arith.constant 0 : index
    %9 = vector.load %arg3[%c3, %c0_10] : memref<8x128xf32, #tpu.memory_space<vmem>>, vector<1x128xf32>
    %cst = arith.constant dense<0.000000e+00> : vector<8x128xf32>
    %10 = tpu.matmul %1, %2, %cst {dimension_numbers = #tpu.dot_dimension_numbers<[1], [0], [0], [1], [0, 0, 1, 1], [], []>} : vector<8x10xbf16>, vector<10x128xbf16>, vector<8x128xf32> -> vector<8x128xf32>
    %11 = vector.broadcast %6 : vector<1x128xf32> to vector<8x128xf32>
    %12 = arith.addf %10, %11 : vector<8x128xf32>
    %cst_11 = arith.constant 0.000000e+00 : f32
    %13 = vector.broadcast %cst_11 : f32 to vector<8x128xf32>
    %14 = arith.maximumf %12, %13 : vector<8x128xf32>
    %15 = arith.truncf %14 : vector<8x128xf32> to vector<8x128xbf16>
    %cst_12 = arith.constant dense<0.000000e+00> : vector<8x128xf32>
    %16 = tpu.matmul %15, %3, %cst_12 {dimension_numbers = #tpu.dot_dimension_numbers<[1], [0], [0], [1], [0, 0, 1, 1], [], []>} : vector<8x128xbf16>, vector<128x128xbf16>, vector<8x128xf32> -> vector<8x128xf32>
    %17 = vector.broadcast %7 : vector<1x128xf32> to vector<8x128xf32>
    %18 = arith.addf %16, %17 : vector<8x128xf32>
    %cst_13 = arith.constant 0.000000e+00 : f32
    %19 = vector.broadcast %cst_13 : f32 to vector<8x128xf32>
    %20 = arith.maximumf %18, %19 : vector<8x128xf32>
    %21 = arith.truncf %20 : vector<8x128xf32> to vector<8x128xbf16>
    %cst_14 = arith.constant dense<0.000000e+00> : vector<8x128xf32>
    %22 = tpu.matmul %21, %4, %cst_14 {dimension_numbers = #tpu.dot_dimension_numbers<[1], [0], [0], [1], [0, 0, 1, 1], [], []>} : vector<8x128xbf16>, vector<128x128xbf16>, vector<8x128xf32> -> vector<8x128xf32>
    %23 = vector.broadcast %8 : vector<1x128xf32> to vector<8x128xf32>
    %24 = arith.addf %22, %23 : vector<8x128xf32>
    %cst_15 = arith.constant 0.000000e+00 : f32
    %25 = vector.broadcast %cst_15 : f32 to vector<8x128xf32>
    %26 = arith.maximumf %24, %25 : vector<8x128xf32>
    %27 = arith.truncf %26 : vector<8x128xf32> to vector<8x128xbf16>
    %cst_16 = arith.constant dense<0.000000e+00> : vector<8x128xf32>
    %28 = tpu.matmul %27, %5, %cst_16 {dimension_numbers = #tpu.dot_dimension_numbers<[1], [0], [0], [1], [0, 0, 1, 1], [], []>} : vector<8x128xbf16>, vector<128x128xbf16>, vector<8x128xf32> -> vector<8x128xf32>
    %29 = vector.broadcast %9 : vector<1x128xf32> to vector<8x128xf32>
    %30 = arith.addf %28, %29 : vector<8x128xf32>
    %31 = vector.extract_strided_slice %30 {offsets = [0, 0], sizes = [8, 16], strides = [1, 1]} : vector<8x128xf32> to vector<8x16xf32>
    %c0_17 = arith.constant 0 : index
    %c0_18 = arith.constant 0 : index
    %32 = vector.load %arg4[%c0_17, %c0_18] : memref<8x16xf32, #tpu.memory_space<vmem>>, vector<8x16xf32>
    tpu.vector_store %arg4[%c0_17, %c0_18], %31 {strides = array<i32>} : memref<8x16xf32, #tpu.memory_space<vmem>>, vector<8x16xf32>,
    return
  }
  func.func @transform_0(%arg0: i32) -> (i32, i32) {
    %c0_i32 = arith.constant 0 : i32
    %c0_i32_0 = arith.constant 0 : i32
    return %arg0, %c0_i32 : i32, i32
  }
  func.func @transform_1(%arg0: i32) -> (i32, i32) {
    %c0_i32 = arith.constant 0 : i32
    %c0_i32_0 = arith.constant 0 : i32
    %c0_i32_1 = arith.constant 0 : i32
    return %c0_i32, %c0_i32_0 : i32, i32
  }
  func.func @transform_2(%arg0: i32) -> (i32, i32) {
    %c0_i32 = arith.constant 0 : i32
    %c0_i32_0 = arith.constant 0 : i32
    %c0_i32_1 = arith.constant 0 : i32
    return %c0_i32, %c0_i32_0 : i32, i32
  }
  func.func @transform_3(%arg0: i32) -> (i32, i32) {
    %c0_i32 = arith.constant 0 : i32
    %c0_i32_0 = arith.constant 0 : i32
    return %arg0, %c0_i32 : i32, i32
  }
}

</mosaic_0001>

<bundles_post_ra>
// kernel: tictactoe_net_forward.1
= control target key start
LH: loop header
LB: loop body
LE: loop exit
PB: predicated region body
PF: predicated region fallthrough
CT: control target
= control target key end

     0   :  { %8 = vsyncpa [#allocation3], 0  ;;  %s783_s0 = inlined_call_operand.hbm [shape: f32[8,10], index: 0, kind: input, shape index: {}]   ;;  %s784_s1 = inlined_call_operand.hbm [shape: bf16[512,128], index: 1, kind: input, shape index: {}]   ;;  %s785_s2 = inlined_call_operand.hbm [shape: f32[8,128], index: 2, kind: input, shape index: {}]   ;;  %s786_s3 = inlined_call_operand.hbm [shape: f32[8,16], index: 3, kind: output, shape index: {}]  }
   0x1   :  { %9 = vsyncpa [#allocation6], 0 }
   0x2   :  { %10 = vsyncpa [#allocation4], 0  ;;  %s710_s12 = smov [#allocation5]  }
   0x3   :  { %s26_s13 = sshll.u32 %s710_s12, 4  ;;  %s27_s13 = int_to_ptr.vmem [resolvable:$true] %s26_s13 }
   0x4   :  { %s632_s14 = scalar_lea.vmem %s27_s13, 4096  ;;  %p637_p1 = scmp.lt.s32.totalorder %s27_s13, %s27_s13 }
   0x5   :  { %p633_p0 = scmp.ne.s32.totalorder %s27_s13, %s632_s14  ;;  %p638_p2 = scmp.lt.s32.totalorder %s632_s14, %s632_s14 }
   0x7   :  { %p639_p3 = por %p638_p2, %p637_p1 }
   0x9   :  { %p640_p4 = pnand %p639_p3, %p633_p0 }
   0xb   :  { %643 = shalt.err (!%p640_p4)
}
   0xc   :  { %s711_s15 = smov 64   ;;  %s712_s16 = smov 4  }
   0xd   :  { %32 = dma.hbm_to_vmem [thread:$0]  %s784_s1, 4096, %s27_s13, [#allocation6], %s711_s15, %s711_s15, %s712_s16  }
   0xe   :  { %s713_s19 = smov [#allocation2]   ;;  %s714_s21 = smov [#allocation7]  }
   0xf   :  { %s17_s20 = sshll.u32 %s713_s19, 4  ;;  %s39_s22 = sshll.u32 %s714_s21, 4  ;;  %s18_s20 = int_to_ptr.vmem [resolvable:$true] %s17_s20  ;;  %s40_s22 = int_to_ptr.vmem [resolvable:$true] %s39_s22 }
  0x10   :  { %s652_s23 = scalar_lea.vmem %s18_s20, 128  ;;  %p657_p6 = scmp.lt.s32.totalorder %s18_s20, %s18_s20 }
  0x11   :  { %p653_p5 = scmp.ne.s32.totalorder %s18_s20, %s652_s23  ;;  %p658_p7 = scmp.lt.s32.totalorder %s652_s23, %s652_s23 }
  0x13   :  { %p659_p8 = por %p658_p7, %p657_p6 }
  0x15   :  { %p660_p9 = pnand %p659_p8, %p653_p5 }
  0x17   :  { %663 = shalt.err (!%p660_p9)
}
  0x18   :  { %20 = dma.hbm_to_vmem [thread:$0]  %s783_s0, 128, %s18_s20, [#allocation3]  }
  0x19   :  { %s672_s26 = scalar_lea.vmem %s40_s22, 128  ;;  %p677_p11 = scmp.lt.s32.totalorder %s40_s22, %s40_s22 }
  0x1a   :  { %p673_p10 = scmp.ne.s32.totalorder %s40_s22, %s672_s26  ;;  %p678_p12 = scmp.lt.s32.totalorder %s672_s26, %s672_s26 }
  0x1c   :  { %p679_p13 = por %p678_p12, %p677_p11 }
  0x1e   :  { %p680_p0 = pnand %p679_p13, %p673_p10 }
  0x20   :  { %683 = shalt.err (!%p680_p0)
}
  0x21   :  { %42 = dma.hbm_to_vmem [thread:$0]  %s785_s2, 128, %s40_s22, [#allocation6]  }
  0x22   :  { %704 = dma.done.wait [#allocation3], 128  }
  0x23   :  { %705 = vsyncadd [#allocation3], 4294967168 }
  0x24   :  { %706 = dma.done.wait [#allocation6], 4224  }
  0x25   :  { %707 = vsyncadd [#allocation6], 4294963072  ;;  %v715_v0 = vmov 0.0   ;;  %vm716_vm0 = vmmov 0   ;;  %vm122_vm1 = vcmask 1044480   ;;  %v53_v2 = vld [vmem:[#allocation2] sm:$0xff] }
  0x26   :  { %525 = vmatprep.subr.bf16.mxu0 %v715_v0  ;;  %527 = vmatprep.mubr.msk.bf16.mxu0 %vm716_vm0, %v715_v0  ;;  %v599_v1 = vld [vmem:[#allocation5] sm:$0x1f]   ;;  %v54_v4 = vpack.c.bf16 %v53_v2, %v53_v2  ;;  %v600_v5 = vld [vmem:[#allocation5 + $0x78] sm:$0xff]   ;;  %vm118_vm2 = vcmask 80896   ;;  %v601_v6 = vld [vmem:[#allocation5 + $0x70] sm:$0xff]   ;;  %s717_s0 = smov [#allocation8]  }
  0x27   :  { %531 = vmatprep.subr.bf16.mxu1 %v715_v0  ;;  %547 = vmatprep.mubr.msk.bf16.mxu1 %vm716_vm0, %v715_v0  ;;  %v124_v3 = vsel %vm122_vm1, %v599_v1, 0  ;;  %v602_v7 = vld [vmem:[#allocation5 + $0x68] sm:$0xff]   ;;  %v603_v8 = vld [vmem:[#allocation5 + $0x60] sm:$0xff]   ;;  %v604_v9 = vld [vmem:[#allocation5 + $0x58] sm:$0xff]   ;;  %s456_s2 = sshll.u32 %s717_s0, 4  ;;  %vm448_vm3 = vcmask 130048   ;;  %s457_s2 = int_to_ptr.vmem [resolvable:$true] %s456_s2 }
  0x28   :  { %526 = vmatpush3.bf16.msra.mxu0 %v124_v3  ;;  %532 = vmatpush3.bf16.msra.mxu1 %v600_v5  ;;  %v605_v10 = vld [vmem:[#allocation5 + $0x50] sm:$0xff]   ;;  %v606_v11 = vld [vmem:[#allocation5 + $0x48] sm:$0xff]   ;;  %v607_v12 = vld [vmem:[#allocation5 + $0x40] sm:$0xff]   ;;  %s684_s28 = scalar_lea.vmem %s457_s2, 128  ;;  %p689_p2 = scmp.lt.s32.totalorder %s457_s2, %s457_s2 }
  0x29   :  { %551 = vmatprep.subr.bf16.mxu0 %v715_v0  ;;  %533 = vmatprep.subr.bf16.mxu1 %v715_v0  ;;  %v608_v13 = vld [vmem:[#allocation5 + $0xb8] sm:$0xff]   ;;  %v609_v14 = vld [vmem:[#allocation5 + $0xb0] sm:$0xff]   ;;  %v610_v15 = vld [vmem:[#allocation5 + $0xa8] sm:$0xff]   ;;  %p685_p1 = scmp.ne.s32.totalorder %s457_s2, %s684_s28  ;;  %p690_p3 = scmp.lt.s32.totalorder %s684_s28, %s684_s28 }
  0x2a   :  { %v611_v16 = vld [vmem:[#allocation5 + $0xa0] sm:$0xff]   ;;  %v612_v17 = vld [vmem:[#allocation5 + $0x98] sm:$0xff]   ;;  %v613_v18 = vld [vmem:[#allocation5 + $0x90] sm:$0xff]  }
  0x2b   :  { %528 = vmatmul.mubr.msk.bf16.vlgmr.msra.gmra.mxu0 %vm118_vm2, %v54_v4  ;;  %v466_v19 = vld [vmem:[#allocation7] ss:$0 sm:$0xff]  ;;  %v614_v27 = vld [vmem:[#allocation5 + $0x88] sm:$0xff]   ;;  %v616_v29 = vld [vmem:[#allocation5 + $0xf8] sm:$0xff]   ;;  %p691_p4 = por %p690_p3, %p689_p2 }
  0x2c   :  { %567 = vmatprep.mubr.msk.bf16.mxu0 %vm716_vm0, %v715_v0  ;;  %534 = vmatpush3.bf16.msra.mxu1 %v601_v6  ;;  %v615_v28 = vld [vmem:[#allocation5 + $0x80] sm:$0xff]   ;;  %v617_v30 = vld [vmem:[#allocation5 + $0xf0] sm:$0xff]   ;;  %v618_v31 = vld [vmem:[#allocation5 + $0xe8] sm:$0xff]  }
  0x2d   :  { %535 = vmatprep.subr.bf16.mxu1 %v715_v0  ;;  %552 = vmatpush3.bf16.msra.mxu0 %v608_v13  ;;  %v619_v32 = vld [vmem:[#allocation5 + $0xe0] sm:$0xff]   ;;  %v620_v33 = vld [vmem:[#allocation5 + $0xd8] sm:$0xff]   ;;  %v621_v34 = vld [vmem:[#allocation5 + $0xd0] sm:$0xff]   ;;  %p692_p5 = pnand %p691_p4, %p685_p1 }
  0x2e   :  { %553 = vmatprep.subr.bf16.mxu0 %v715_v0  ;;  %v469_v35 = vld [vmem:[#allocation7 + $0x1] ss:$0 sm:$0xff]  ;;  %v622_v43 = vld [vmem:[#allocation5 + $0xc8] sm:$0xff]   ;;  %v478_v45 = vld [vmem:[#allocation7 + $0x2] ss:$0 sm:$0xff] }
  0x2f   :  { %v623_v44 = vld [vmem:[#allocation5 + $0xc0] sm:$0xff]  }
  0x30   :  { %536 = vmatpush3.bf16.msra.mxu1 %v602_v7  ;;  %v487_v53 = vld [vmem:[#allocation7 + $0x3] ss:$0 sm:$0xff] }
  0x31   :  { %537 = vmatprep.subr.bf16.mxu1 %v715_v0  ;;  %554 = vmatpush3.bf16.msra.mxu0 %v609_v14 }
  0x32   :  { %555 = vmatprep.subr.bf16.mxu0 %v715_v0 }
  0x34   :  { %538 = vmatpush3.bf16.msra.mxu1 %v603_v8 }
  0x35   :  { %539 = vmatprep.subr.bf16.mxu1 %v715_v0  ;;  %556 = vmatpush3.bf16.msra.mxu0 %v610_v15 }
  0x36   :  { %557 = vmatprep.subr.bf16.mxu0 %v715_v0 }
  0x38   :  { %540 = vmatpush3.bf16.msra.mxu1 %v604_v9 }
  0x39   :  { %541 = vmatprep.subr.bf16.mxu1 %v715_v0  ;;  %558 = vmatpush3.bf16.msra.mxu0 %v611_v16 }
  0x3a   :  { %559 = vmatprep.subr.bf16.mxu0 %v715_v0 }
  0x3c   :  { %542 = vmatpush3.bf16.msra.mxu1 %v605_v10 }
  0x3d   :  { %543 = vmatprep.subr.bf16.mxu1 %v715_v0  ;;  %560 = vmatpush3.bf16.msra.mxu0 %v612_v17 }
  0x3e   :  { %561 = vmatprep.subr.bf16.mxu0 %v715_v0 }
  0x40   :  { %544 = vmatpush3.bf16.msra.mxu1 %v606_v11 }
  0x41   :  { %545 = vmatprep.subr.bf16.mxu1 %v715_v0  ;;  %562 = vmatpush3.bf16.msra.mxu0 %v613_v18 }
  0x42   :  { %563 = vmatprep.subr.bf16.mxu0 %v715_v0 }
  0x44   :  { %546 = vmatpush3.bf16.msra.mxu1 %v607_v12 }
  0x45   :  { %571 = vmatprep.subr.bf16.mxu1 %v715_v0  ;;  %564 = vmatpush3.bf16.msra.mxu0 %v614_v27 }
  0x46   :  { %565 = vmatprep.subr.bf16.mxu0 %v715_v0 }
  0x49   :  { %566 = vmatpush3.bf16.msra.mxu0 %v615_v28 }
  0xeb   :  { %v160_v20 = vpop.f32.mrf.mxu0 }
  0xec   :  { %v161_v21 = vadd.f32 %v466_v19, %v160_v20 }
  0xed   :  { %v529_v22 = vpop.f32.mrf.mxu0 }
  0xee   :  { %v166_v23 = vmax.f32 %v161_v21, 0.0 }
  0xef   :  { %v163_v24 = vpop.f32.mrf.mxu0 }
  0xf0   :  { %v167_v25 = vpack.c.bf16 %v166_v23, %v166_v23 }
  0xf1   :  { %v530_v26 = vpop.f32.mrf.mxu0 }
  0xf2   :  { %548 = vmatmul.mubr.bf16.vlgmr.msra.gmra.mxu1 %v167_v25 }
  0xf3   :  { %587 = vmatprep.mubr.msk.bf16.mxu1 %vm716_vm0, %v715_v0  ;;  %572 = vmatpush3.bf16.msra.mxu1 %v616_v29 }
  0xf4   :  { %573 = vmatprep.subr.bf16.mxu1 %v715_v0 }
  0xf7   :  { %574 = vmatpush3.bf16.msra.mxu1 %v617_v30 }
  0xf8   :  { %575 = vmatprep.subr.bf16.mxu1 %v715_v0 }
  0xfb   :  { %576 = vmatpush3.bf16.msra.mxu1 %v618_v31 }
  0xfc   :  { %577 = vmatprep.subr.bf16.mxu1 %v715_v0 }
  0xff   :  { %578 = vmatpush3.bf16.msra.mxu1 %v619_v32 }
 0x100   :  { %579 = vmatprep.subr.bf16.mxu1 %v715_v0 }
 0x103   :  { %580 = vmatpush3.bf16.msra.mxu1 %v620_v33 }
 0x104   :  { %581 = vmatprep.subr.bf16.mxu1 %v715_v0 }
 0x107   :  { %582 = vmatpush3.bf16.msra.mxu1 %v621_v34 }
 0x108   :  { %583 = vmatprep.subr.bf16.mxu1 %v715_v0 }
 0x10b   :  { %584 = vmatpush3.bf16.msra.mxu1 %v622_v43 }
 0x10c   :  { %585 = vmatprep.subr.bf16.mxu1 %v715_v0 }
 0x10f   :  { %586 = vmatpush3.bf16.msra.mxu1 %v623_v44 }
 0x1b2   :  { %v254_v36 = vpop.f32.mrf.mxu1 }
 0x1b3   :  { %v255_v37 = vadd.f32 %v469_v35, %v254_v36 }
 0x1b4   :  { %v549_v38 = vpop.f32.mrf.mxu1 }
 0x1b5   :  { %v260_v39 = vmax.f32 %v255_v37, 0.0 }
 0x1b6   :  { %v257_v40 = vpop.f32.mrf.mxu1 }
 0x1b7   :  { %v261_v41 = vpack.c.bf16 %v260_v39, %v260_v39 }
 0x1b8   :  { %v550_v42 = vpop.f32.mrf.mxu1 }
 0x1b9   :  { %568 = vmatmul.mubr.bf16.vlgmr.msra.gmra.mxu0 %v261_v41 }
 0x279   :  { %v348_v46 = vpop.f32.mrf.mxu0 }
 0x27a   :  { %v349_v47 = vadd.f32 %v478_v45, %v348_v46 }
 0x27b   :  { %v569_v48 = vpop.f32.mrf.mxu0 }
 0x27c   :  { %v354_v49 = vmax.f32 %v349_v47, 0.0 }
 0x27d   :  { %v351_v50 = vpop.f32.mrf.mxu0 }
 0x27e   :  { %v355_v51 = vpack.c.bf16 %v354_v49, %v354_v49 }
 0x27f   :  { %v570_v52 = vpop.f32.mrf.mxu0 }
 0x280   :  { %588 = vmatmul.mubr.bf16.vlgmr.msra.gmra.mxu1 %v355_v51 }
 0x340   :  { %v442_v54 = vpop.f32.mrf.mxu1 }
 0x341   :  { %v443_v55 = vadd.f32 %v487_v53, %v442_v54 }
 0x342   :  { %v589_v56 = vpop.f32.mrf.mxu1 }
 0x343   :  { %449 = vst.msk [vmem:[#allocation8] sm:$0xff] %vm448_vm3, %v443_v55 }
 0x344   :  { %v445_v57 = vpop.f32.mrf.mxu1 }
 0x345   :  { %695 = shalt.err (!%p692_p5)
}
 0x346   :  { %459 = dma.vmem_to_hbm [thread:$0]  %s457_s2, 128, %s786_s3, [#allocation4]   ;;  %v590_v58 = vpop.f32.mrf.mxu1 }
 0x347   :  { %708 = dma.done.wait [#allocation4], 128  }
 0x348   :  { %709 = vsyncadd [#allocation4], 4294967168 }
 0x349   :  { %463 = vsyncpa [#allocation3], 1 }
 0x34a   :  { %464 = vsyncpa [#allocation6], 1 }
 0x34b   :  { %465 = vsyncpa [#allocation4], 1 }

</bundles_post_ra>
